<compile_context>
chip_gen: v7x
topology: tpu7x:2x2x1
jax: 0.10.0
libtpu: 0.0.40
codegen_flags: <defaults>
</compile_context>

<pallas_src>
import functools

import jax
import jax.numpy as jnp
from jax.experimental import pallas as pl
from jax.experimental.pallas import tpu as pltpu


def _round_up(n, m):
    return (n + m - 1) // m * m


def dqn_kernel(x_ref, w1_ref, w23_ref, b_ref, q_ref, a_ref, *, num_actions):
    # x_ref: [TB, state_dim]   (narrow, un-padded)
    # w1_ref: [state_dim, P], w23_ref: [2, P, P], b_ref: [3, 1, P] (f32)
    cdt = w1_ref.dtype                      # compute dtype for the MXU (f32 or bf16)
    x = x_ref[...].astype(cdt)

    h = jnp.maximum(jnp.dot(x, w1_ref[...], preferred_element_type=jnp.float32) + b_ref[0], 0.0)
    h = jnp.maximum(jnp.dot(h.astype(cdt), w23_ref[0], preferred_element_type=jnp.float32) + b_ref[1], 0.0)
    q = jnp.maximum(jnp.dot(h.astype(cdt), w23_ref[1], preferred_element_type=jnp.float32) + b_ref[2], 0.0)

    # Store only the real action columns (narrow, lane-masked store of 2 lanes
    # is negligible versus the 64x HBM writeback savings).
    q_ref[...] = q[:, :num_actions]

    # Fused greedy argmax over the real action columns (padded lanes masked).
    # max + min-index reductions (tie -> lowest index, same as jnp.argmax).
    col = jax.lax.broadcasted_iota(jnp.int32, q.shape, 1)
    neg = jnp.finfo(jnp.float32).min
    masked = jnp.where(col < num_actions, q, neg)
    qmax = jnp.max(masked, axis=-1, keepdims=True)
    idx = jnp.where(masked >= qmax, col, q.shape[-1])
    a_ref[...] = jnp.min(idx, axis=-1, keepdims=True).astype(jnp.int32)


def pack_dqn_params(params, *, use_bf16=False):
    """Pad/stack the weights ONCE (hoisted out of the per-call path).

    params: weights stored [in, out], biases [1, out].
    Returns a dict holding the packed device arrays + static shape metadata.
    """
    w1, b1 = params["w1"], params["b1"]
    w2, b2 = params["w2"], params["b2"]
    w3, b3 = params["w3"], params["b3"]

    state_dim, hidden_dim = w1.shape
    num_actions = w3.shape[1]

    # Common lane-aligned feature width for the hidden/output dims only
    # (x and Q are streamed narrow; only internal activations use P lanes).
    P = _round_up(max(hidden_dim, num_actions), 128)

    wdt = jnp.bfloat16 if use_bf16 else jnp.float32

    def pad2(a, rows, cols):
        return jnp.pad(a, ((0, rows - a.shape[0]), (0, cols - a.shape[1])))

    w1_p = pad2(w1, state_dim, P).astype(wdt)                      # [state_dim, P]
    w23_p = jnp.stack([pad2(w2, P, P), pad2(w3, P, P)]).astype(wdt)  # [2, P, P]
    b_p = jnp.stack([pad2(b1, 1, P), pad2(b2, 1, P), pad2(b3, 1, P)])  # [3, 1, P] f32

    return {
        "w1": w1_p, "w23": w23_p, "b": b_p,
        "state_dim": state_dim, "hidden_dim": hidden_dim,
        "num_actions": num_actions, "P": P,
    }


def dqn_forward(x, packed, *, block_batch=512, interpret=False):
    """x: [B, state_dim] f32. packed: output of pack_dqn_params.

    Returns (q_values [B, num_actions] f32, greedy_actions [B] int32)."""
    B, state_dim = x.shape
    assert state_dim == packed["state_dim"]
    num_actions = packed["num_actions"]
    P = packed["P"]
    w1_p, w23_p, b_p = packed["w1"], packed["w23"], packed["b"]

    # Batch tiling: multiple of 8 (f32 sublane). Once the batch is >= 512 rows,
    # make sure the grid has >= 2 steps so v7x's two TensorCores both engage;
    # keep tiles a multiple of 128 (matches v5e's 128-tall MXU).
    B_pad8 = _round_up(B, 8)
    if B_pad8 >= 512:
        half = _round_up(-(-B_pad8 // 2), 128)
        TB = min(block_batch, max(256, half))
    else:
        TB = B_pad8
    B_pad = _round_up(B_pad8, TB)
    grid = (B_pad // TB,)

    # VMEM guard (v7x: 32 MiB default scoped budget on a 64 MiB/TC part).
    # Count resident weights/biases and double-buffered x/q/a tiles, with
    # conservative lane/sublane rounding. If hidden_dim is ever scaled past
    # this, switch the weight specs to K/N tiling.
    w_item = w1_p.dtype.itemsize
    vmem_est = (
        2 * (_round_up(state_dim, 8) * P + 2 * P * P) * w_item   # w1 + w23
        + 2 * 3 * 8 * P * 4                                       # biases
        + 2 * TB * _round_up(state_dim, 128) * 4                  # x tiles
        + 2 * TB * _round_up(num_actions, 128) * 4                # q tiles
        + 2 * TB * 128 * 4                                        # argmax tiles
    )
    assert vmem_est <= 32 * 1024 * 1024, "tile/hidden size too large for resident-weight design"

    x_pad = jnp.pad(x, ((0, B_pad - B), (0, 0)))   # row padding only, columns stay narrow

    q_pad, a_pad = pl.pallas_call(
        functools.partial(dqn_kernel, num_actions=num_actions),
        out_shape=(
            jax.ShapeDtypeStruct((B_pad, num_actions), jnp.float32),  # narrow Q
            jax.ShapeDtypeStruct((B_pad, 1), jnp.int32),              # fused greedy argmax
        ),
        grid=grid,
        in_specs=[
            pl.BlockSpec((TB, state_dim), lambda i: (i, 0)),     # x: narrow, tiled over batch
            pl.BlockSpec((state_dim, P), lambda i: (0, 0)),      # w1: VMEM-resident
            pl.BlockSpec((2, P, P), lambda i: (0, 0, 0)),        # w2/w3 slab: VMEM-resident
            pl.BlockSpec((3, 1, P), lambda i: (0, 0, 0)),        # biases: VMEM-resident
        ],
        out_specs=(
            pl.BlockSpec((TB, num_actions), lambda i: (i, 0)),
            pl.BlockSpec((TB, 1), lambda i: (i, 0)),
        ),
        compiler_params=pltpu.CompilerParams(
            dimension_semantics=("parallel",),                   # megacore sharding on v7x
        ),
        interpret=interpret,
    )(x_pad, w1_p, w23_p, b_p)

    return q_pad[:B], a_pad[:B, 0]


def init_dqn_params(key, state_dim, hidden_dim, num_actions):
    """Mimics torch.nn.Linear default init (uniform +-1/sqrt(fan_in)).
    Weights stored as [in, out] (transpose of PyTorch's [out, in]); biases [1, out]."""
    ks = jax.random.split(key, 6)

    def lin(kw, kb, fan_in, fan_out):
        bound = 1.0 / jnp.sqrt(jnp.float32(fan_in))
        w = jax.random.uniform(kw, (fan_in, fan_out), jnp.float32, -bound, bound)
        b = jax.random.uniform(kb, (1, fan_out), jnp.float32, -bound, bound)
        return w, b

    w1, b1 = lin(ks[0], ks[1], state_dim, hidden_dim)
    w2, b2 = lin(ks[2], ks[3], hidden_dim, hidden_dim)
    w3, b3 = lin(ks[4], ks[5], hidden_dim, num_actions)
    return {"w1": w1, "b1": b1, "w2": w2, "b2": b2, "w3": w3, "b3": b3}


def dqn_reference(x, params):
    h1 = jnp.maximum(x @ params["w1"] + params["b1"], 0.0)
    h2 = jnp.maximum(h1 @ params["w2"] + params["b2"], 0.0)
    q = jnp.maximum(h2 @ params["w3"] + params["b3"], 0.0)
    return q


if __name__ == "__main__":
    # Shapes consistent with a CartPole-style DQN: state_dim=4, hidden=32, actions=2.
    batch, state_dim, hidden_dim, num_actions = 8, 4, 32, 2

    key = jax.random.PRNGKey(0)
    kx, kp, kx2 = jax.random.split(key, 3)
    x = jax.random.normal(kx, (batch, state_dim), jnp.float32)
    params = init_dqn_params(kp, state_dim, hidden_dim, num_actions)
    packed = pack_dqn_params(params)          # packed ONCE, reused across calls

    # Acting-sized call (single small tile).
    q, greedy = dqn_forward(x, packed)
    q = jax.block_until_ready(q)
    greedy = jax.block_until_ready(greedy)

    q_ref = dqn_reference(x, params)
    assert q.shape == (batch, num_actions)
    assert greedy.shape == (batch,)
    assert jnp.allclose(q, q_ref, atol=1e-5, rtol=1e-5), "Q mismatch vs pure-JAX reference"
    assert jnp.array_equal(greedy, jnp.argmax(q_ref, axis=-1)), "argmax mismatch"

    # Replay-batch sized call: exercises the multi-step batch grid (2 tiles of 384)
    # plus row padding (600 -> 768).
    x2 = jax.random.normal(kx2, (600, state_dim), jnp.float32)
    q2, greedy2 = dqn_forward(x2, packed)
    q2 = jax.block_until_ready(q2)
    q2_ref = dqn_reference(x2, params)
    assert q2.shape == (600, num_actions)
    assert jnp.allclose(q2, q2_ref, atol=1e-5, rtol=1e-5), "Q mismatch (batched) vs reference"
    assert jnp.array_equal(greedy2, jnp.argmax(q2_ref, axis=-1)), "argmax mismatch (batched)"

    print("KERNEL_OK")
</pallas_src>

<mosaic_0001>
module attributes {stable_mosaic.version = 11 : i64} {
  func.func @dqn_kernel(%arg0: i32, %arg1: memref<8x4xf32, #tpu.memory_space<vmem>>, %arg2: memref<4x128xf32, #tpu.memory_space<vmem>>, %arg3: memref<2x128x128xf32, #tpu.memory_space<vmem>>, %arg4: memref<3x1x128xf32, #tpu.memory_space<vmem>>, %arg5: memref<8x2xf32, #tpu.memory_space<vmem>>, %arg6: memref<8x1xi32, #tpu.memory_space<vmem>>) attributes {dimension_semantics = [#tpu.dimension_semantics<parallel>], iteration_bounds = array<i64: 1>, scalar_prefetch = 0 : i64, scratch_operands = 0 : i64, tpu.core_type = #tpu.core_type<tc>, window_params = [{transform_indices = @transform_0, window_bounds = array<i64: 8, 4>}, {pipeline_mode = #tpu.pipeline_mode<synchronous>, transform_indices = @transform_1, window_bounds = array<i64: 4, 128>}, {pipeline_mode = #tpu.pipeline_mode<synchronous>, transform_indices = @transform_2, window_bounds = array<i64: 2, 128, 128>}, {pipeline_mode = #tpu.pipeline_mode<synchronous>, transform_indices = @transform_3, window_bounds = array<i64: 3, 1, 128>}, {transform_indices = @transform_4, window_bounds = array<i64: 8, 2>}, {transform_indices = @transform_5, window_bounds = array<i64: 8, 1>}]} {
    %c0 = arith.constant 0 : index
    %c0_0 = arith.constant 0 : index
    %0 = vector.load %arg1[%c0, %c0_0] : memref<8x4xf32, #tpu.memory_space<vmem>>, vector<8x4xf32>
    %c0_1 = arith.constant 0 : index
    %c0_2 = arith.constant 0 : index
    %1 = vector.load %arg2[%c0_1, %c0_2] : memref<4x128xf32, #tpu.memory_space<vmem>>, vector<4x128xf32>
    %cst = arith.constant dense<0.000000e+00> : vector<8x128xf32>
    %2 = tpu.matmul %0, %1, %cst {dimension_numbers = #tpu.dot_dimension_numbers<[1], [0], [0], [1], [0, 0, 1, 1], [], []>} : vector<8x4xf32>, vector<4x128xf32>, vector<8x128xf32> -> vector<8x128xf32>
    %c0_3 = arith.constant 0 : index
    %c0_4 = arith.constant 0 : index
    %c0_5 = arith.constant 0 : index
    %3 = vector.load %arg4[%c0_3, %c0_4, %c0_5] : memref<3x1x128xf32, #tpu.memory_space<vmem>>, vector<1x1x128xf32>
    %4 = vector.shape_cast %3 : vector<1x1x128xf32> to vector<1x128xf32>
    %5 = vector.broadcast %4 : vector<1x128xf32> to vector<8x128xf32>
    %6 = arith.addf %2, %5 : vector<8x128xf32>
    %cst_6 = arith.constant 0.000000e+00 : f32
    %7 = vector.broadcast %cst_6 : f32 to vector<8x128xf32>
    %8 = arith.maximumf %6, %7 : vector<8x128xf32>
    %c0_7 = arith.constant 0 : index
    %c0_8 = arith.constant 0 : index
    %c0_9 = arith.constant 0 : index
    %9 = vector.load %arg3[%c0_7, %c0_8, %c0_9] : memref<2x128x128xf32, #tpu.memory_space<vmem>>, vector<1x128x128xf32>
    %10 = vector.shape_cast %9 : vector<1x128x128xf32> to vector<128x128xf32>
    %cst_10 = arith.constant dense<0.000000e+00> : vector<8x128xf32>
    %11 = tpu.matmul %8, %10, %cst_10 {dimension_numbers = #tpu.dot_dimension_numbers<[1], [0], [0], [1], [0, 0, 1, 1], [], []>} : vector<8x128xf32>, vector<128x128xf32>, vector<8x128xf32> -> vector<8x128xf32>
    %c1 = arith.constant 1 : index
    %c0_11 = arith.constant 0 : index
    %c0_12 = arith.constant 0 : index
    %12 = vector.load %arg4[%c1, %c0_11, %c0_12] : memref<3x1x128xf32, #tpu.memory_space<vmem>>, vector<1x1x128xf32>
    %13 = vector.shape_cast %12 : vector<1x1x128xf32> to vector<1x128xf32>
    %14 = vector.broadcast %13 : vector<1x128xf32> to vector<8x128xf32>
    %15 = arith.addf %11, %14 : vector<8x128xf32>
    %cst_13 = arith.constant 0.000000e+00 : f32
    %16 = vector.broadcast %cst_13 : f32 to vector<8x128xf32>
    %17 = arith.maximumf %15, %16 : vector<8x128xf32>
    %c1_14 = arith.constant 1 : index
    %c0_15 = arith.constant 0 : index
    %c0_16 = arith.constant 0 : index
    %18 = vector.load %arg3[%c1_14, %c0_15, %c0_16] : memref<2x128x128xf32, #tpu.memory_space<vmem>>, vector<1x128x128xf32>
    %19 = vector.shape_cast %18 : vector<1x128x128xf32> to vector<128x128xf32>
    %cst_17 = arith.constant dense<0.000000e+00> : vector<8x128xf32>
    %20 = tpu.matmul %17, %19, %cst_17 {dimension_numbers = #tpu.dot_dimension_numbers<[1], [0], [0], [1], [0, 0, 1, 1], [], []>} : vector<8x128xf32>, vector<128x128xf32>, vector<8x128xf32> -> vector<8x128xf32>
    %c2 = arith.constant 2 : index
    %c0_18 = arith.constant 0 : index
    %c0_19 = arith.constant 0 : index
    %21 = vector.load %arg4[%c2, %c0_18, %c0_19] : memref<3x1x128xf32, #tpu.memory_space<vmem>>, vector<1x1x128xf32>
    %22 = vector.shape_cast %21 : vector<1x1x128xf32> to vector<1x128xf32>
    %23 = vector.broadcast %22 : vector<1x128xf32> to vector<8x128xf32>
    %24 = arith.addf %20, %23 : vector<8x128xf32>
    %cst_20 = arith.constant 0.000000e+00 : f32
    %25 = vector.broadcast %cst_20 : f32 to vector<8x128xf32>
    %26 = arith.maximumf %24, %25 : vector<8x128xf32>
    %27 = vector.extract_strided_slice %26 {offsets = [0, 0], sizes = [8, 2], strides = [1, 1]} : vector<8x128xf32> to vector<8x2xf32>
    %c0_21 = arith.constant 0 : index
    %c0_22 = arith.constant 0 : index
    %28 = vector.load %arg5[%c0_21, %c0_22] : memref<8x2xf32, #tpu.memory_space<vmem>>, vector<8x2xf32>
    tpu.vector_store %arg5[%c0_21, %c0_22], %27 {strides = array<i32>} : memref<8x2xf32, #tpu.memory_space<vmem>>, vector<8x2xf32>,
    %29 = tpu.iota {dimensions = array<i32: 1>} : vector<8x128xi32>
    %c2_i32 = arith.constant 2 : i32
    %30 = vector.broadcast %c2_i32 : i32 to vector<8x128xi32>
    %31 = arith.cmpi slt, %29, %30 : vector<8x128xi32>
    %cst_23 = arith.constant -3.40282347E+38 : f32
    %32 = vector.broadcast %cst_23 : f32 to vector<8x128xf32>
    %33 = arith.select %31, %26, %32 : vector<8x128xi1>, vector<8x128xf32>
    %cst_24 = arith.constant dense<0xFF800000> : vector<8xf32>
    %34 = vector.multi_reduction <maximumf>, %33, %cst_24 [1] : vector<8x128xf32> to vector<8xf32>
    %35 = vector.shape_cast %34 : vector<8xf32> to vector<8x1xf32>
    %36 = vector.broadcast %35 : vector<8x1xf32> to vector<8x128xf32>
    %37 = arith.cmpf oge, %33, %36 : vector<8x128xf32>
    %c128_i32 = arith.constant 128 : i32
    %38 = vector.broadcast %c128_i32 : i32 to vector<8x128xi32>
    %39 = arith.select %37, %29, %38 : vector<8x128xi1>, vector<8x128xi32>
    %cst_25 = arith.constant dense<2147483647> : vector<8xi32>
    %40 = vector.multi_reduction <minsi>, %39, %cst_25 [1] : vector<8x128xi32> to vector<8xi32>
    %41 = vector.shape_cast %40 : vector<8xi32> to vector<8x1xi32>
    %c0_26 = arith.constant 0 : index
    %c0_27 = arith.constant 0 : index
    %42 = vector.load %arg6[%c0_26, %c0_27] : memref<8x1xi32, #tpu.memory_space<vmem>>, vector<8x1xi32>
    tpu.vector_store %arg6[%c0_26, %c0_27], %41 {strides = array<i32>} : memref<8x1xi32, #tpu.memory_space<vmem>>, vector<8x1xi32>,
    return
  }
  func.func @transform_0(%arg0: i32) -> (i32, i32) {
    %c0_i32 = arith.constant 0 : i32
    %c0_i32_0 = arith.constant 0 : i32
    return %arg0, %c0_i32 : i32, i32
  }
  func.func @transform_1(%arg0: i32) -> (i32, i32) {
    %c0_i32 = arith.constant 0 : i32
    %c0_i32_0 = arith.constant 0 : i32
    %c0_i32_1 = arith.constant 0 : i32
    return %c0_i32, %c0_i32_0 : i32, i32
  }
  func.func @transform_2(%arg0: i32) -> (i32, i32, i32) {
    %c0_i32 = arith.constant 0 : i32
    %c0_i32_0 = arith.constant 0 : i32
    %c0_i32_1 = arith.constant 0 : i32
    %c0_i32_2 = arith.constant 0 : i32
    return %c0_i32, %c0_i32_0, %c0_i32_1 : i32, i32, i32
  }
  func.func @transform_3(%arg0: i32) -> (i32, i32, i32) {
    %c0_i32 = arith.constant 0 : i32
    %c0_i32_0 = arith.constant 0 : i32
    %c0_i32_1 = arith.constant 0 : i32
    %c0_i32_2 = arith.constant 0 : i32
    return %c0_i32, %c0_i32_0, %c0_i32_1 : i32, i32, i32
  }
  func.func @transform_4(%arg0: i32) -> (i32, i32) {
    %c0_i32 = arith.constant 0 : i32
    %c0_i32_0 = arith.constant 0 : i32
    return %arg0, %c0_i32 : i32, i32
  }
  func.func @transform_5(%arg0: i32) -> (i32, i32) {
    %c0_i32 = arith.constant 0 : i32
    %c0_i32_0 = arith.constant 0 : i32
    return %arg0, %c0_i32 : i32, i32
  }
}

</mosaic_0001>

<bundles_post_ra>
// kernel: tpu_custom_call.1
= control target key start
LH: loop header
LB: loop body
LE: loop exit
PB: predicated region body
PF: predicated region fallthrough
CT: control target
= control target key end

     0   :  { %11 = vsyncpa [#allocation3], 0  ;;  %s543_s18 = smov [#allocation2]   ;;  %s631_s0 = inlined_call_operand.vmem [shape: f32[8,4], index: 0, kind: input, shape index: {}]   ;;  %s632_s1 = inlined_call_operand.vmem [shape: f32[4,128], index: 1, kind: input, shape index: {}]   ;;  %s633_s2 = inlined_call_operand.hbm [shape: f32[2,128,128], index: 2, kind: input, shape index: {}]   ;;  %s634_s3 = inlined_call_operand.vmem [shape: f32[3,1,128], index: 3, kind: input, shape index: {}]   ;;  %s635_s4 = inlined_call_operand.vmem [shape: f32[8,2], index: 4, kind: output, shape index: {0}]   ;;  %s636_s5 = inlined_call_operand.vmem [shape: s32[8,1], index: 5, kind: output, shape index: {1}]  }
   0x1   :  { %s21_s19 = sshll.u32 %s543_s18, 4  ;;  %s519_s22 = scalar_lea.hbm %s633_s2, 4096  ;;  %s22_s19 = int_to_ptr.vmem [resolvable:$true] %s21_s19 }
   0x2   :  { %p520_p0 = scmp.ne.s32.totalorder %s633_s2, %s519_s22  ;;  %p523_p1 = scmp.lt.u32.totalorder %s519_s22, %s633_s2 }
   0x4   :  { %p525_p2 = pnand %p523_p1, %p520_p0 }
   0x6   :  { %528 = shalt.err (!%p525_p2)
}
   0x7   :  { %s529_s27 = scalar_lea.vmem %s22_s19, 4096  ;;  %p534_p4 = scmp.lt.s32.totalorder %s22_s19, %s22_s19 }
   0x8   :  { %p530_p3 = scmp.ne.s32.totalorder %s22_s19, %s529_s27  ;;  %p535_p5 = scmp.lt.s32.totalorder %s529_s27, %s529_s27 }
   0xa   :  { %p536_p6 = por %p535_p5, %p534_p4 }
   0xc   :  { %p537_p7 = pnand %p536_p6, %p530_p3 }
   0xe   :  { %540 = shalt.err (!%p537_p7)
}
   0xf   :  { %s544_s28 = smov 128   ;;  %s545_s29 = smov 8  }
  0x10   :  { %27 = dma.hbm_to_vmem [thread:$0]  %s633_s2, 4096, %s22_s19, [#allocation3], %s544_s28, %s544_s28, %s545_s29  }
  0x11   :  { %541 = dma.done.wait [#allocation3], 4096  }
  0x12   :  { %542 = vsyncadd [#allocation3], 4294963200  ;;  %v546_v0 = vmov 0.0   ;;  %vm547_vm0 = vmmov 0   ;;  %v548_v1 = vmov 0.0|0.0   ;;  %vm46_vm1 = vcmask 1043456  }
  0x13   :  { %390 = vmatprep.subr.mxu0 %v546_v0  ;;  %392 = vmatprep.mubr.msk.f32.mxu0 %vm547_vm0, %v546_v0  ;;  %vm42_vm2 = vcmask 31744   ;;  %v34_v2 = vld [vmem:[%s632_s1] sm:$0xf]  ;;  %v122_v5 = vld [vmem:[#allocation2 + $0x8] sm:$0xff]  ;;  %v123_v6 = vld [vmem:[#allocation2 + $0x10] sm:$0xff]  ;;  %v314_v62 = vlaneseq  ;;  %vm312_vm3 = vcmask 15360  }
  0x14   :  { %465 = vmatprep.subr.bf16.mxu1 %v548_v1  ;;  %427 = vmatprep.mubr.msk.f32.mxu1 %vm547_vm0, %v546_v0  ;;  %v33_v3 = vld [vmem:[%s631_s0] sm:$0xff]  ;;  %v124_v7 = vld [vmem:[#allocation2 + $0x18] sm:$0xff]  ;;  %v126_v11 = vld [vmem:[#allocation2 + $0x28] sm:$0xff]  ;;  %vm336_vm7 = vcmask 7168  }
  0x15   :  { %v121_v4 = vld [vmem:[#allocation2] sm:$0xff]  ;;  %391 = vmatpush3.msk.msra.mxu0 %vm46_vm1, %v34_v2  ;;  %v469_v9 = vpack.c.bf16 %v124_v7, %v123_v6  ;;  %v127_v13 = vld [vmem:[#allocation2 + $0x30] sm:$0xff]  ;;  %v128_v14 = vld [vmem:[#allocation2 + $0x38] sm:$0xff] }
  0x16   :  { %393 = vmatmul.mubr.msk.f32.vlgmr.msra.gmra.mrb[0].mxu0 %vm42_vm2, %v33_v3  ;;  %v466_v8 = vpack.c.bf16 %v122_v5, %v121_v4  ;;  %489 = vmatprep.subr.bf16.mxu0 %v548_v1  ;;  %v125_v10 = vld [vmem:[#allocation2 + $0x20] sm:$0xff]  ;;  %v475_v15 = vpack.c.bf16 %v128_v14, %v127_v13  ;;  %v130_v17 = vld [vmem:[#allocation2 + $0x48] sm:$0xff]  ;;  %v131_v19 = vld [vmem:[#allocation2 + $0x50] sm:$0xff] }
  0x17   :  { %462 = vmatprep.mubr.msk.f32.mxu0 %vm547_vm0, %v546_v0  ;;  %v472_v12 = vpack.c.bf16 %v126_v11, %v125_v10  ;;  %v129_v16 = vld [vmem:[#allocation2 + $0x40] sm:$0xff]  ;;  %v132_v20 = vld [vmem:[#allocation2 + $0x58] sm:$0xff]  ;;  %v134_v23 = vld [vmem:[#allocation2 + $0x68] sm:$0xff]  ;;  %v315_v0 = vand.u32 127, %v314_v62 }
  0x18   :  { %467 = vmatpush3.bf16.msra.mxu1 %v466_v8  ;;  %v478_v18 = vpack.c.bf16 %v130_v17, %v129_v16  ;;  %v481_v21 = vpack.c.bf16 %v132_v20, %v131_v19  ;;  %v133_v22 = vld [vmem:[#allocation2 + $0x60] sm:$0xff]  ;;  %v135_v25 = vld [vmem:[#allocation2 + $0x70] sm:$0xff]  ;;  %v136_v26 = vld [vmem:[#allocation2 + $0x78] sm:$0xff] }
  0x19   :  { %468 = vmatprep.subr.bf16.mxu1 %v548_v1  ;;  %v484_v24 = vpack.c.bf16 %v134_v23, %v133_v22  ;;  %v487_v27 = vpack.c.bf16 %v136_v26, %v135_v25  ;;  %v217_v28 = vld [vmem:[#allocation2 + $0x80] sm:$0xff]  ;;  %v218_v29 = vld [vmem:[#allocation2 + $0x88] sm:$0xff]  ;;  %v219_v30 = vld [vmem:[#allocation2 + $0x90] sm:$0xff]  ;;  %vm316_vm4 = vcmp.lt.s32.totalorder %v315_v0, 2 }
  0x1a   :  { %v490_v31 = vpack.c.bf16 %v218_v29, %v217_v28  ;;  %v220_v32 = vld [vmem:[#allocation2 + $0x98] sm:$0xff]  ;;  %v221_v34 = vld [vmem:[#allocation2 + $0xa0] sm:$0xff]  ;;  %v222_v35 = vld [vmem:[#allocation2 + $0xa8] sm:$0xff] }
  0x1b   :  { %v493_v33 = vpack.c.bf16 %v220_v32, %v219_v30  ;;  %v496_v36 = vpack.c.bf16 %v222_v35, %v221_v34  ;;  %v223_v37 = vld [vmem:[#allocation2 + $0xb0] sm:$0xff]  ;;  %v224_v38 = vld [vmem:[#allocation2 + $0xb8] sm:$0xff]  ;;  %v225_v40 = vld [vmem:[#allocation2 + $0xc0] sm:$0xff] }
  0x1c   :  { %470 = vmatpush3.bf16.msra.mxu1 %v469_v9  ;;  %491 = vmatpush3.bf16.msra.mxu0 %v490_v31  ;;  %v499_v39 = vpack.c.bf16 %v224_v38, %v223_v37  ;;  %v226_v41 = vld [vmem:[#allocation2 + $0xc8] sm:$0xff]  ;;  %v227_v43 = vld [vmem:[#allocation2 + $0xd0] sm:$0xff]  ;;  %v228_v44 = vld [vmem:[#allocation2 + $0xd8] sm:$0xff] }
  0x1d   :  { %471 = vmatprep.subr.bf16.mxu1 %v548_v1  ;;  %492 = vmatprep.subr.bf16.mxu0 %v548_v1  ;;  %v502_v42 = vpack.c.bf16 %v226_v41, %v225_v40  ;;  %v505_v45 = vpack.c.bf16 %v228_v44, %v227_v43  ;;  %v229_v46 = vld [vmem:[#allocation2 + $0xe0] sm:$0xff]  ;;  %v230_v47 = vld [vmem:[#allocation2 + $0xe8] sm:$0xff]  ;;  %v231_v54 = vld [vmem:[#allocation2 + $0xf0] sm:$0xff] }
  0x1e   :  { %v508_v48 = vpack.c.bf16 %v230_v47, %v229_v46  ;;  %v347_v49 = vld [vmem:[%s634_s3] ss:$0 sm:$0xff]  ;;  %v232_v55 = vld [vmem:[#allocation2 + $0xf8] sm:$0xff]  ;;  %v351_v57 = vld [vmem:[%s634_s3 + $0x1] ss:$0 sm:$0xff] }
  0x1f   :  { %v511_v56 = vpack.c.bf16 %v232_v55, %v231_v54  ;;  %v353_v63 = vld [vmem:[%s634_s3 + $0x2] ss:$0 sm:$0xff] }
  0x20   :  { %473 = vmatpush3.bf16.msra.mxu1 %v472_v12  ;;  %494 = vmatpush3.bf16.msra.mxu0 %v493_v33 }
  0x21   :  { %474 = vmatprep.subr.bf16.mxu1 %v548_v1  ;;  %495 = vmatprep.subr.bf16.mxu0 %v548_v1 }
  0x24   :  { %476 = vmatpush3.bf16.msra.mxu1 %v475_v15  ;;  %497 = vmatpush3.bf16.msra.mxu0 %v496_v36 }
  0x25   :  { %477 = vmatprep.subr.bf16.mxu1 %v548_v1  ;;  %498 = vmatprep.subr.bf16.mxu0 %v548_v1 }
  0x28   :  { %479 = vmatpush3.bf16.msra.mxu1 %v478_v18  ;;  %500 = vmatpush3.bf16.msra.mxu0 %v499_v39 }
  0x29   :  { %480 = vmatprep.subr.bf16.mxu1 %v548_v1  ;;  %501 = vmatprep.subr.bf16.mxu0 %v548_v1 }
  0x2c   :  { %482 = vmatpush3.bf16.msra.mxu1 %v481_v21  ;;  %503 = vmatpush3.bf16.msra.mxu0 %v502_v42 }
  0x2d   :  { %483 = vmatprep.subr.bf16.mxu1 %v548_v1  ;;  %504 = vmatprep.subr.bf16.mxu0 %v548_v1 }
  0x30   :  { %485 = vmatpush3.bf16.msra.mxu1 %v484_v24  ;;  %506 = vmatpush3.bf16.msra.mxu0 %v505_v45 }
  0x31   :  { %486 = vmatprep.subr.bf16.mxu1 %v548_v1  ;;  %507 = vmatprep.subr.bf16.mxu0 %v548_v1 }
  0x34   :  { %488 = vmatpush3.bf16.msra.mxu1 %v487_v27  ;;  %509 = vmatpush3.bf16.msra.mxu0 %v508_v48 }
  0x35   :  { %510 = vmatprep.subr.bf16.mxu0 %v548_v1 }
  0x38   :  { %512 = vmatpush3.bf16.msra.mxu0 %v511_v56 }
  0xe9   :  { %v116_v50 = vpop.f32.mrb[0].mxu0 }
  0xea   :  { %v117_v51 = vadd.f32 %v347_v49, %v116_v50  ;;  %v394_v52 = vpop.f32.mrb[1].mxu0 }
  0xec   :  { %v120_v53 = vmax.f32 %v117_v51, 0.0 }
  0xee   :  { %428 = vmatmul.mubr.f32.vlgmr.msra.gmra.mrb[0].mxu1 %v120_v53 }
 0x1c1   :  { %v211_v58 = vpop.f32.mrb[0].mxu1 }
 0x1c2   :  { %v212_v59 = vadd.f32 %v351_v57, %v211_v58  ;;  %v429_v60 = vpop.f32.mrb[1].mxu1 }
 0x1c4   :  { %v215_v61 = vmax.f32 %v212_v59, 0.0 }
 0x1c6   :  { %463 = vmatmul.mubr.f32.vlgmr.msra.gmra.mrb[2].mxu0 %v215_v61 }
 0x299   :  { %v307_v1 = vpop.f32.mrb[2].mxu0 }
 0x29a   :  { %v308_v2 = vadd.f32 %v353_v63, %v307_v1  ;;  %v464_v3 = vpop.f32.mrb[3].mxu0 }
 0x29c   :  { %v311_v4 = vmax.f32 %v308_v2, 0.0 }
 0x29e   :  { %313 = vst.msk [vmem:[%s635_s4] sm:$0xff] %vm312_vm3, %v311_v4  ;;  %v317_v5 = vsel %vm316_vm4, %v311_v4, -3.4028235e+38 }
 0x29f   :  { %318 = vmax.xlane.f32.xlu0 %v317_v5 }
 0x32c   :  { %v319_v6 = vpop.xlane.xlu0 %318 }
 0x32d   :  { %vm320_vm5 = vcmp.ge.f32.partialorder %v317_v5, %v319_v6 }
 0x32e   :  { %v321_v7 = vsel %vm320_vm5, %v315_v0, 128 }
 0x32f   :  { %v323_v8 = vshra.s32 %v321_v7, 16  ;;  %v322_v10 = vand.u32 65535, %v321_v7 }
 0x331   :  { %v325_v9 = vcvt.s32.f32 %v323_v8  ;;  %v324_v12 = vcvt.s32.f32 %v322_v10 }
 0x333   :  { %326 = vmin.xlane.f32.xlu0 %v325_v9 }
 0x3c0   :  { %v327_v11 = vpop.xlane.xlu0 %326 }
 0x3c1   :  { %vm328_vm6 = vcmp.eq.f32.partialorder %v325_v9, %v327_v11  ;;  %v333_v14 = vcvt.f32.s32 %v327_v11 }
 0x3c2   :  { %v329_v13 = vsel %vm328_vm6, %v324_v12, inf }
 0x3c3   :  { %330 = vmin.xlane.f32.xlu1 %v329_v13  ;;  %v334_v16 = vshll.u32 %v333_v14, 16 }
 0x450   :  { %v331_v15 = vpop.xlane.xlu1 %330 }
 0x451   :  { %v332_v17 = vcvt.f32.s32 %v331_v15 }
 0x453   :  { %v335_v18 = vadd.s32 %v334_v16, %v332_v17 }
 0x455   :  { %337 = vst.msk [vmem:[%s636_s5] sm:$0xff] %vm336_vm7, %v335_v18 }
 0x456   :  { %346 = vsyncpa [#allocation3], 1 }

</bundles_post_ra>
